<compile_context>
chip_gen: v7x
topology: tpu7x:2x2x1
jax: 0.10.0
libtpu: 0.0.40
codegen_flags: <defaults>
</compile_context>

<pallas_src>
import functools
import math

import jax
import jax.numpy as jnp
from jax.experimental import pallas as pl
from jax.experimental.pallas import tpu as pltpu

EXPANSION = 4  # BottleNeck.expansion


def _round_up(x, m):
    return (x + m - 1) // m * m


def _sigmoid(x):
    return 1.0 / (1.0 + jnp.exp(-x))


# --------------------------------------------------------------------------
# Tile selection (per-call): avoid K over-padding, fill the MXU, keep at
# least two tiles on a parallel grid axis where it is cheap to do so.
# --------------------------------------------------------------------------
def _tiles_for(M, K, N):
    # M tile
    if M >= 512:
        TM = 256
    elif M >= 128:
        TM = 128
    else:
        TM = _round_up(max(M, 8), 8)

    # K tile: Kp close to K; TK a multiple of 128 that divides Kp.
    Kp = _round_up(K, 128)
    q = Kp // 128
    kmax = 16 if TM <= 128 else 8          # bigger K tiles when A tiles are small
    if q <= kmax:
        TK = Kp
    else:
        d = max(x for x in range(1, kmax + 1) if q % x == 0)
        if d < 3:
            # poor divisor: pad K a little further to get a decent tile
            for extra in range(1, kmax + 1):
                d2 = max(x for x in range(1, kmax + 1) if (q + extra) % x == 0)
                if d2 >= 4:
                    q += extra
                    Kp = 128 * q
                    d = d2
                    break
        TK = 128 * d

    # N tile (lane-dense, 256 wide when possible)
    TN = min(256, _round_up(N, 128))
    m_tiles = _round_up(M, TM) // TM
    # if both parallel axes would collapse to 1 tile, split N so a second
    # TensorCore (v7x) has work
    if m_tiles == 1 and TN == 256 and N > 128 and _round_up(N, 256) == 256:
        TN = 128
    return TM, TK, TN, Kp


# --------------------------------------------------------------------------
# Pallas kernel 1: tiled bf16 matmul, f32 accumulator, fused
# scale/bias(+residual)(+ReLU) epilogue.  Grid = (M/TM, N/TN, K/TK), K
# innermost ("arbitrary"); accumulator persists across K steps.
# --------------------------------------------------------------------------
def _mm_kernel(a_ref, b_ref, s_ref, c_ref, o_ref, acc_ref, *, act):
    @pl.when(pl.program_id(2) == 0)
    def _():
        acc_ref[...] = jnp.zeros_like(acc_ref)

    acc_ref[...] += jnp.dot(a_ref[...], b_ref[...],
                            preferred_element_type=jnp.float32)

    @pl.when(pl.program_id(2) == pl.num_programs(2) - 1)
    def _():
        y = acc_ref[...] * s_ref[...] + c_ref[...]
        if act == "relu":
            y = jnp.maximum(y, 0.0)
        o_ref[...] = y.astype(o_ref.dtype)


def _mm_res_kernel(a_ref, b_ref, s_ref, c_ref, r_ref, o_ref, acc_ref, *, act):
    @pl.when(pl.program_id(2) == 0)
    def _():
        acc_ref[...] = jnp.zeros_like(acc_ref)

    acc_ref[...] += jnp.dot(a_ref[...], b_ref[...],
                            preferred_element_type=jnp.float32)

    @pl.when(pl.program_id(2) == pl.num_programs(2) - 1)
    def _():
        y = acc_ref[...] * s_ref[...] + c_ref[...] + r_ref[...].astype(jnp.float32)
        if act == "relu":
            y = jnp.maximum(y, 0.0)
        o_ref[...] = y.astype(o_ref.dtype)


@functools.partial(jax.jit, static_argnames=("act", "out_dtype"))
def matmul_scale_bias(a, b, scale, bias, act=None, residual=None,
                      out_dtype=jnp.float32):
    """out = act((a @ b) * scale + bias [+ residual]).

    a:(M,K) b:(K,N) scale/bias:(N,) residual:(M,N) or None.
    A/B/residual are cast to bf16; accumulation and epilogue are f32.
    """
    M, K = a.shape
    K2, N = b.shape
    assert K == K2
    TM, TK, TN, Kp = _tiles_for(M, K, N)
    Mp, Np = _round_up(M, TM), _round_up(N, TN)

    a = jnp.pad(a.astype(jnp.bfloat16), ((0, Mp - M), (0, Kp - K)))
    b = jnp.pad(b.astype(jnp.bfloat16), ((0, Kp - K), (0, Np - N)))
    scale = jnp.pad(scale.astype(jnp.float32).reshape(1, N),
                    ((0, 0), (0, Np - N)))
    bias = jnp.pad(bias.astype(jnp.float32).reshape(1, N),
                   ((0, 0), (0, Np - N)))

    in_specs = [
        pl.BlockSpec((TM, TK), lambda i, j, k: (i, k)),
        pl.BlockSpec((TK, TN), lambda i, j, k: (k, j)),
        pl.BlockSpec((1, TN), lambda i, j, k: (0, j)),
        pl.BlockSpec((1, TN), lambda i, j, k: (0, j)),
    ]
    operands = [a, b, scale, bias]
    if residual is not None:
        r = jnp.pad(residual.astype(jnp.bfloat16),
                    ((0, Mp - M), (0, Np - N)))
        in_specs.append(pl.BlockSpec((TM, TN), lambda i, j, k: (i, j)))
        operands.append(r)
        kernel = functools.partial(_mm_res_kernel, act=act)
    else:
        kernel = functools.partial(_mm_kernel, act=act)

    grid = (Mp // TM, Np // TN, Kp // TK)
    out = pl.pallas_call(
        kernel,
        out_shape=jax.ShapeDtypeStruct((Mp, Np), out_dtype),
        grid_spec=pltpu.PrefetchScalarGridSpec(
            num_scalar_prefetch=0,
            grid=grid,
            in_specs=in_specs,
            out_specs=pl.BlockSpec((TM, TN), lambda i, j, k: (i, j)),
            scratch_shapes=[pltpu.VMEM((TM, TN), jnp.float32)],
        ),
        compiler_params=pltpu.CompilerParams(
            dimension_semantics=("parallel", "parallel", "arbitrary")),
    )(*operands)
    return out[:M, :N]


# --------------------------------------------------------------------------
# Pallas kernel 2: fused binary elementwise ops, lane-dense (rows, 512)
# layout with a parallel grid over row tiles.
# --------------------------------------------------------------------------
def _ew_kernel(a_ref, b_ref, o_ref, *, op):
    a = a_ref[...].astype(jnp.float32)
    b = b_ref[...].astype(jnp.float32)
    if op == "add":
        o = a + b
    elif op == "gated":          # CsCp placeholder: cross-gated fusion
        o = a * _sigmoid(b) + b * _sigmoid(a)
    else:
        raise ValueError(op)
    o_ref[...] = o.astype(o_ref.dtype)


@functools.partial(jax.jit, static_argnames=("op", "out_dtype"))
def elementwise2(a, b, op, out_dtype=jnp.bfloat16):
    shape = a.shape
    total = a.size
    LANE = 512
    cols = LANE if total % LANE == 0 else shape[-1]
    rows = total // cols
    a2 = a.reshape(rows, cols)
    b2 = b.reshape(rows, cols)
    blk_r = rows
    for cand in (512, 256, 128, 64, 32, 16, 8):
        if cand <= rows // 2 and rows % cand == 0:
            blk_r = cand
            break
    out = pl.pallas_call(
        functools.partial(_ew_kernel, op=op),
        out_shape=jax.ShapeDtypeStruct((rows, cols), out_dtype),
        grid_spec=pltpu.PrefetchScalarGridSpec(
            num_scalar_prefetch=0,
            grid=(rows // blk_r,),
            in_specs=[pl.BlockSpec((blk_r, cols), lambda i: (i, 0)),
                      pl.BlockSpec((blk_r, cols), lambda i: (i, 0))],
            out_specs=pl.BlockSpec((blk_r, cols), lambda i: (i, 0)),
        ),
        compiler_params=pltpu.CompilerParams(
            dimension_semantics=("parallel",)),
    )(a2, b2)
    return out.reshape(shape)


# --------------------------------------------------------------------------
# Pallas kernel 3: global average pool (AdaptiveAvgPool2d((1,1))).
# Only applied at the deepest stage (tiny spatial), so a single block is fine.
# --------------------------------------------------------------------------
def _gap_kernel(x_ref, o_ref):
    o_ref[...] = jnp.mean(x_ref[...].astype(jnp.float32), axis=1)


@jax.jit
def global_avg_pool(x):
    """x: (B, H, W, C) -> (B, C) f32 (mean over spatial)."""
    B, H, W, C = x.shape
    x3 = x.reshape(B, H * W, C)
    return pl.pallas_call(
        _gap_kernel,
        out_shape=jax.ShapeDtypeStruct((B, C), jnp.float32),
    )(x3)


# --------------------------------------------------------------------------
# Pallas kernel 4: BAM channel gating with in-kernel broadcast of the (B,C)
# attention vector (no HBM-materialized att_map).
# --------------------------------------------------------------------------
def _bam_scale_kernel(x_ref, att_ref, o_ref):
    x = x_ref[...].astype(jnp.float32)          # (B, HW, C)
    att = att_ref[...].astype(jnp.float32)      # (B, C)
    gate = 1.0 + _sigmoid(att)
    o_ref[...] = (x * gate[:, None, :]).astype(o_ref.dtype)


@jax.jit
def _bam_scale(x3, att):
    return pl.pallas_call(
        _bam_scale_kernel,
        out_shape=jax.ShapeDtypeStruct(x3.shape, x3.dtype),
    )(x3, att)


# --------------------------------------------------------------------------
# Conv2d = im2col (JAX glue, bf16) + Pallas matmul kernel with fused epilogue.
# TODO(synk): fold the (kh,kw) tap walk into the matmul grid instead of
# materializing the im2col tensor (stride-1 window walk); bf16 halves its
# HBM traffic in the meantime.
# --------------------------------------------------------------------------
def _extract_patches(x, kh, kw, stride, pad):
    if pad:
        x = jnp.pad(x, ((0, 0), (pad, pad), (pad, pad), (0, 0)))
    B, Hp, Wp, C = x.shape
    Ho = (Hp - kh) // stride + 1
    Wo = (Wp - kw) // stride + 1
    cols = []
    for i in range(kh):
        for j in range(kw):
            cols.append(x[:, i:i + stride * Ho:stride,
                          j:j + stride * Wo:stride, :])
    if len(cols) == 1:
        return cols[0], Ho, Wo
    return jnp.concatenate(cols, axis=-1), Ho, Wo


@functools.partial(jax.jit, static_argnames=("stride", "relu", "out_dtype"))
def conv2d(x, w, scale=None, bias=None, stride=1, relu=False, residual=None,
           out_dtype=jnp.bfloat16):
    """x: (B,H,W,Cin) NHWC, w: (kh,kw,Cin,Cout) HWIO. padding = (kh-1)//2.

    Optionally fuses a residual add (same shape as the output) and ReLU into
    the matmul epilogue.
    """
    kh, kw, cin, cout = w.shape
    pad = (kh - 1) // 2
    patches, Ho, Wo = _extract_patches(x.astype(jnp.bfloat16), kh, kw, stride,
                                       pad)
    B = x.shape[0]
    a = patches.reshape(B * Ho * Wo, kh * kw * cin)
    bm = w.reshape(kh * kw * cin, cout)
    if scale is None:
        scale = jnp.ones((cout,), jnp.float32)
    if bias is None:
        bias = jnp.zeros((cout,), jnp.float32)
    res2 = None
    if residual is not None:
        res2 = residual.reshape(B * Ho * Wo, cout)
    y = matmul_scale_bias(a, bm, scale, bias,
                          act="relu" if relu else None,
                          residual=res2, out_dtype=out_dtype)
    return y.reshape(B, Ho, Wo, cout)


def linear(x, w, b):
    # Tiny-M (M = batch) dense heads: plain XLA dot per perf review
    # (padding M=2 up to an MXU tile would be pure overhead).
    return jnp.dot(x.astype(jnp.float32), w) + b


# --------------------------------------------------------------------------
# Deterministic parameter initialization (synthetic weights).
# --------------------------------------------------------------------------
class ParamInit:
    def __init__(self, seed=0):
        self._key = jax.random.PRNGKey(seed)

    def _next(self):
        self._key, k = jax.random.split(self._key)
        return k

    def conv(self, kh, kw, cin, cout):
        std = math.sqrt(2.0 / (kh * kw * cin))
        w = jax.random.normal(self._next(), (kh, kw, cin, cout),
                              jnp.float32) * std
        return w.astype(jnp.bfloat16)           # bf16 weights for the MXU

    def linear(self, fin, fout):
        std = math.sqrt(1.0 / fin)
        w = jax.random.normal(self._next(), (fin, fout), jnp.float32) * std
        b = jnp.zeros((fout,), jnp.float32)
        return w, b

    def bn(self, c):
        # inference-mode fold: gamma=1, beta=0, running_mean=0, running_var=1
        eps = 1e-5
        scale = jnp.full((c,), 1.0 / math.sqrt(1.0 + eps), jnp.float32)
        bias = jnp.zeros((c,), jnp.float32)
        return scale, bias


def make_bottleneck_params(pi, cin, cmid, stride):
    p = {"stride": stride}
    p["w1"] = pi.conv(1, 1, cin, cmid)
    p["s1"], p["b1"] = pi.bn(cmid)
    p["w2"] = pi.conv(3, 3, cmid, cmid)
    p["s2"], p["b2"] = pi.bn(cmid)
    p["w3"] = pi.conv(1, 1, cmid, cmid * EXPANSION)
    p["s3"], p["b3"] = pi.bn(cmid * EXPANSION)
    if stride != 1 or cin != cmid * EXPANSION:
        p["ws"] = pi.conv(1, 1, cin, cmid * EXPANSION)
        p["ss"], p["bs"] = pi.bn(cmid * EXPANSION)
    return p


def make_layer_params(pi, state, cmid, num_blocks, stride):
    strides = [stride] + [1] * (num_blocks - 1)
    blocks = []
    for s in strides:
        blocks.append(make_bottleneck_params(pi, state["cin"], cmid, s))
        state["cin"] = cmid * EXPANSION
    return blocks


def init_params(pi, num_block, num_classes=3):
    P = {}
    P["conv11_w"] = pi.conv(3, 3, 3, 64)
    P["conv11_s"], P["conv11_b"] = pi.bn(64)
    P["conv12_w"] = pi.conv(3, 3, 3, 64)
    P["conv12_s"], P["conv12_b"] = pi.bn(64)
    st1, st2 = {"cin": 64}, {"cin": 64}
    P["conv21_x"] = make_layer_params(pi, st1, 64, num_block[0], 1)
    P["conv22_x"] = make_layer_params(pi, st2, 64, num_block[0], 1)
    P["conv31_x"] = make_layer_params(pi, st1, 128, num_block[1], 2)
    P["conv32_x"] = make_layer_params(pi, st2, 128, num_block[1], 2)
    P["conv41_x"] = make_layer_params(pi, st1, 256, num_block[2], 2)
    P["conv42_x"] = make_layer_params(pi, st2, 256, num_block[2], 2)
    P["conv51_x"] = make_layer_params(pi, st1, 512, num_block[3], 2)
    P["conv52_x"] = make_layer_params(pi, st2, 512, num_block[3], 2)
    P["compress11"] = pi.conv(3, 3, 64 * 2, 64)
    P["compress12"] = pi.conv(3, 3, 64 * 2, 64)
    P["compress21"] = pi.conv(3, 3, 256 * 2, 256)
    P["compress22"] = pi.conv(3, 3, 256 * 2, 256)
    P["compress31"] = pi.conv(3, 3, 512 * 2, 512)
    P["compress32"] = pi.conv(3, 3, 512 * 2, 512)
    P["compress41"] = pi.conv(3, 3, 1024 * 2, 1024)
    P["compress42"] = pi.conv(3, 3, 1024 * 2, 1024)
    P["compress5"] = pi.conv(3, 3, 2048 * 3, 2048)
    # CrossViewFusion placeholder projections (1x1 channel lift).
    P["cross1_w"] = pi.conv(1, 1, 64, 256)
    P["cross2_w"] = pi.conv(1, 1, 256, 512)
    P["cross3_w"] = pi.conv(1, 1, 512, 1024)
    P["cross4_w"] = pi.conv(1, 1, 1024, 2048)
    # BAM placeholder (channel-attention MLP, reduction 16).
    P["bam_w1"], P["bam_b1"] = pi.linear(2048, 128)
    P["bam_w2"], P["bam_b2"] = pi.linear(128, 2048)
    # heads
    P["fc_w"], P["fc_b"] = pi.linear(512 * EXPANSION, num_classes)
    P["fc1_w"], P["fc1_b"] = pi.linear(2048, num_classes)
    P["fc2_w"], P["fc2_b"] = pi.linear(2048, num_classes)
    P["fc3_w"], P["fc3_b"] = pi.linear(2048, num_classes)
    return P


# --------------------------------------------------------------------------
# Forward pass pieces
# --------------------------------------------------------------------------
def bottleneck_forward(x, p):
    r = conv2d(x, p["w1"], p["s1"], p["b1"], stride=1, relu=True)
    r = conv2d(r, p["w2"], p["s2"], p["b2"], stride=p["stride"], relu=True)
    if "ws" in p:
        sc = conv2d(x, p["ws"], p["ss"], p["bs"], stride=p["stride"],
                    relu=False)
    else:
        sc = x
    # residual add + ReLU fused into the 3rd conv's matmul epilogue
    return conv2d(r, p["w3"], p["s3"], p["b3"], stride=1, relu=True,
                  residual=sc)


def run_layer(x, blocks):
    for p in blocks:
        x = bottleneck_forward(x, p)
    return x


def cscp(x1, x2):
    # TODO(synk): CsCp module definition not provided in reference; shape-correct cross-gated fusion placeholder.
    return elementwise2(x1, x2, "gated")


def cross_view_fusion(prev, cur, w_proj):
    # TODO(synk): CrossViewFusion definition not provided; placeholder = cur + 1x1_proj(avgpool(prev)).
    r = prev.shape[1] // cur.shape[1]
    if r > 1:
        B, H, W, C = prev.shape
        prev = prev.astype(jnp.float32).reshape(
            B, H // r, r, W // r, r, C).mean(axis=(2, 4))
    proj = conv2d(prev, w_proj, stride=1, relu=False)
    return elementwise2(cur, proj, "add")


def bam(x, P):
    # TODO(synk): BAM definition not provided; channel-attention placeholder x*(1+sigmoid(MLP(GAP(x)))).
    g = global_avg_pool(x)                                   # (B, C) f32
    h = jnp.maximum(jnp.dot(g, P["bam_w1"]) + P["bam_b1"], 0.0)
    att = jnp.dot(h, P["bam_w2"]) + P["bam_b2"]              # (B, C) f32
    B, H, W, C = x.shape
    out = _bam_scale(x.reshape(B, H * W, C), att)
    return out.reshape(B, H, W, C), att


def resnet_forward(P, x1_nchw, x2_nchw):
    # NCHW (PyTorch) -> NHWC
    x1 = jnp.transpose(x1_nchw, (0, 2, 3, 1)).astype(jnp.float32)
    x2 = jnp.transpose(x2_nchw, (0, 2, 3, 1)).astype(jnp.float32)

    x1 = conv2d(x1, P["conv11_w"], P["conv11_s"], P["conv11_b"], stride=1,
                relu=True)
    x2 = conv2d(x2, P["conv12_w"], P["conv12_s"], P["conv12_b"], stride=1,
                relu=True)

    out_1 = cscp(x1, x2)
    x1 = conv2d(jnp.concatenate([x1, out_1], -1), P["compress11"])
    x2 = conv2d(jnp.concatenate([x2, out_1], -1), P["compress12"])

    x1 = run_layer(x1, P["conv21_x"])
    x2 = run_layer(x2, P["conv22_x"])
    out_2 = cscp(x1, x2)
    out_2 = cross_view_fusion(out_1, out_2, P["cross1_w"])
    x1 = conv2d(jnp.concatenate([x1, out_2], -1), P["compress21"])
    x2 = conv2d(jnp.concatenate([x2, out_2], -1), P["compress22"])

    x1 = run_layer(x1, P["conv31_x"])
    x2 = run_layer(x2, P["conv32_x"])
    out_3 = cscp(x1, x2)
    out_3 = cross_view_fusion(out_2, out_3, P["cross2_w"])
    x1 = conv2d(jnp.concatenate([x1, out_3], -1), P["compress31"])
    x2 = conv2d(jnp.concatenate([x2, out_3], -1), P["compress32"])

    x1 = run_layer(x1, P["conv41_x"])
    x2 = run_layer(x2, P["conv42_x"])
    out_4 = cscp(x1, x2)
    out_4 = cross_view_fusion(out_3, out_4, P["cross3_w"])
    x1 = conv2d(jnp.concatenate([x1, out_4], -1), P["compress41"])
    x2 = conv2d(jnp.concatenate([x2, out_4], -1), P["compress42"])

    x1 = run_layer(x1, P["conv51_x"])
    x2 = run_layer(x2, P["conv52_x"])
    out_5 = cscp(x1, x2)
    out_5 = cross_view_fusion(out_4, out_5, P["cross4_w"])

    output_5, _ = bam(out_5, P)
    output_5 = global_avg_pool(output_5)
    output_5 = linear(output_5, P["fc1_w"], P["fc1_b"])

    output = conv2d(jnp.concatenate([x1, x2, out_5], -1), P["compress5"])
    output = global_avg_pool(output)
    output = linear(output, P["fc_w"], P["fc_b"])

    a_1 = linear(global_avg_pool(x1), P["fc2_w"], P["fc2_b"])
    a_2 = linear(global_avg_pool(x2), P["fc3_w"], P["fc3_b"])
    return output, output_5, a_1, a_2


if __name__ == "__main__":
    key = jax.random.PRNGKey(0)
    k1, k2 = jax.random.split(key)
    B, H, W = 2, 32, 32   # small spatial size; channel widths fixed by the module
    x1 = jax.random.normal(k1, (B, 3, H, W), jnp.float32)
    x2 = jax.random.normal(k2, (B, 3, H, W), jnp.float32)

    pi = ParamInit(seed=0)
    # block = BottleNeck (expansion 4); num_block = [1, 1, 1, 1] (small ResNet)
    params = init_params(pi, num_block=[1, 1, 1, 1], num_classes=3)

    outs = resnet_forward(params, x1, x2)
    outs = jax.block_until_ready(outs)

    output, output_5, a_1, a_2 = outs
    assert output.shape == (B, 3) and output_5.shape == (B, 3)
    assert a_1.shape == (B, 3) and a_2.shape == (B, 3)
    assert all(bool(jnp.isfinite(o).all()) for o in outs)
    print("KERNEL_OK")
</pallas_src>

<mosaic_0001>
module attributes {stable_mosaic.version = 11 : i64} {
  func.func @_mm_kernel(%arg0: i32, %arg1: i32, %arg2: i32, %arg3: memref<256x128xbf16, #tpu.memory_space<vmem>>, %arg4: memref<128x128xbf16, #tpu.memory_space<vmem>>, %arg5: memref<1x128xf32, #tpu.memory_space<vmem>>, %arg6: memref<1x128xf32, #tpu.memory_space<vmem>>, %arg7: memref<256x128xbf16, #tpu.memory_space<vmem>>, %arg8: memref<256x128xf32, #tpu.memory_space<vmem>>) attributes {dimension_semantics = [#tpu.dimension_semantics<parallel>, #tpu.dimension_semantics<parallel>, #tpu.dimension_semantics<arbitrary>], iteration_bounds = array<i64: 8, 1, 1>, scalar_prefetch = 0 : i64, scratch_operands = 1 : i64, tpu.core_type = #tpu.core_type<tc>, window_params = [{transform_indices = @transform_0, window_bounds = array<i64: 256, 128>}, {transform_indices = @transform_1, window_bounds = array<i64: 128, 128>}, {transform_indices = @transform_2, window_bounds = array<i64: 1, 128>}, {transform_indices = @transform_3, window_bounds = array<i64: 1, 128>}, {transform_indices = @transform_4, window_bounds = array<i64: 256, 128>}]} {
    %c0_i32 = arith.constant 0 : i32
    %0 = arith.cmpi eq, %arg2, %c0_i32 : i32
    %1 = arith.extui %0 : i1 to i32
    %c0_i32_0 = arith.constant 0 : i32
    %2 = arith.cmpi ne, %1, %c0_i32_0 : i32
    scf.if %2 {
      %cst_10 = arith.constant 0.000000e+00 : f32
      %12 = vector.broadcast %cst_10 : f32 to vector<256x128xf32>
      %c0_11 = arith.constant 0 : index
      %c0_12 = arith.constant 0 : index
      %13 = vector.load %arg8[%c0_11, %c0_12] : memref<256x128xf32, #tpu.memory_space<vmem>>, vector<256x128xf32>
      tpu.vector_store %arg8[%c0_11, %c0_12], %12 {strides = array<i32>} : memref<256x128xf32, #tpu.memory_space<vmem>>, vector<256x128xf32>,
    } else {
    }
    %c0 = arith.constant 0 : index
    %c0_1 = arith.constant 0 : index
    %3 = vector.load %arg8[%c0, %c0_1] : memref<256x128xf32, #tpu.memory_space<vmem>>, vector<256x128xf32>
    %c0_2 = arith.constant 0 : index
    %c0_3 = arith.constant 0 : index
    %4 = vector.load %arg3[%c0_2, %c0_3] : memref<256x128xbf16, #tpu.memory_space<vmem>>, vector<256x128xbf16>
    %c0_4 = arith.constant 0 : index
    %c0_5 = arith.constant 0 : index
    %5 = vector.load %arg4[%c0_4, %c0_5] : memref<128x128xbf16, #tpu.memory_space<vmem>>, vector<128x128xbf16>
    %cst = arith.constant dense<0.000000e+00> : vector<256x128xf32>
    %6 = tpu.matmul %4, %5, %cst {dimension_numbers = #tpu.dot_dimension_numbers<[1], [0], [0], [1], [0, 0, 1, 1], [], []>} : vector<256x128xbf16>, vector<128x128xbf16>, vector<256x128xf32> -> vector<256x128xf32>
    %7 = arith.addf %3, %6 : vector<256x128xf32>
    %c0_6 = arith.constant 0 : index
    %c0_7 = arith.constant 0 : index
    %8 = vector.load %arg8[%c0_6, %c0_7] : memref<256x128xf32, #tpu.memory_space<vmem>>, vector<256x128xf32>
    tpu.vector_store %arg8[%c0_6, %c0_7], %7 {strides = array<i32>} : memref<256x128xf32, #tpu.memory_space<vmem>>, vector<256x128xf32>,
    %c0_i32_8 = arith.constant 0 : i32
    %9 = arith.cmpi eq, %arg2, %c0_i32_8 : i32
    %10 = arith.extui %9 : i1 to i32
    %c0_i32_9 = arith.constant 0 : i32
    %11 = arith.cmpi ne, %10, %c0_i32_9 : i32
    scf.if %11 {
      %c0_10 = arith.constant 0 : index
      %c0_11 = arith.constant 0 : index
      %12 = vector.load %arg8[%c0_10, %c0_11] : memref<256x128xf32, #tpu.memory_space<vmem>>, vector<256x128xf32>
      %c0_12 = arith.constant 0 : index
      %c0_13 = arith.constant 0 : index
      %13 = vector.load %arg5[%c0_12, %c0_13] : memref<1x128xf32, #tpu.memory_space<vmem>>, vector<1x128xf32>
      %14 = vector.broadcast %13 : vector<1x128xf32> to vector<256x128xf32>
      %15 = arith.mulf %12, %14 : vector<256x128xf32>
      %c0_14 = arith.constant 0 : index
      %c0_15 = arith.constant 0 : index
      %16 = vector.load %arg6[%c0_14, %c0_15] : memref<1x128xf32, #tpu.memory_space<vmem>>, vector<1x128xf32>
      %17 = vector.broadcast %16 : vector<1x128xf32> to vector<256x128xf32>
      %18 = arith.addf %15, %17 : vector<256x128xf32>
      %cst_16 = arith.constant 0.000000e+00 : f32
      %19 = vector.broadcast %cst_16 : f32 to vector<256x128xf32>
      %20 = arith.maximumf %18, %19 : vector<256x128xf32>
      %21 = arith.truncf %20 : vector<256x128xf32> to vector<256x128xbf16>
      %c0_17 = arith.constant 0 : index
      %c0_18 = arith.constant 0 : index
      %22 = vector.load %arg7[%c0_17, %c0_18] : memref<256x128xbf16, #tpu.memory_space<vmem>>, vector<256x128xbf16>
      tpu.vector_store %arg7[%c0_17, %c0_18], %21 {strides = array<i32>} : memref<256x128xbf16, #tpu.memory_space<vmem>>, vector<256x128xbf16>,
    } else {
    }
    return
  }
  func.func @transform_0(%arg0: i32, %arg1: i32, %arg2: i32) -> (i32, i32) {
    %c0_i32 = arith.constant 0 : i32
    return %arg0, %arg2 : i32, i32
  }
  func.func @transform_1(%arg0: i32, %arg1: i32, %arg2: i32) -> (i32, i32) {
    %c0_i32 = arith.constant 0 : i32
    return %arg2, %arg1 : i32, i32
  }
  func.func @transform_2(%arg0: i32, %arg1: i32, %arg2: i32) -> (i32, i32) {
    %c0_i32 = arith.constant 0 : i32
    %c0_i32_0 = arith.constant 0 : i32
    return %c0_i32, %arg1 : i32, i32
  }
  func.func @transform_3(%arg0: i32, %arg1: i32, %arg2: i32) -> (i32, i32) {
    %c0_i32 = arith.constant 0 : i32
    %c0_i32_0 = arith.constant 0 : i32
    return %c0_i32, %arg1 : i32, i32
  }
  func.func @transform_4(%arg0: i32, %arg1: i32, %arg2: i32) -> (i32, i32) {
    %c0_i32 = arith.constant 0 : i32
    return %arg0, %arg1 : i32, i32
  }
}

</mosaic_0001>

<bundles_post_ra>
// kernel: matmul_scale_bias.1
= control target key start
LH: loop header
LB: loop body
LE: loop exit
PB: predicated region body
PF: predicated region fallthrough
CT: control target
= control target key end

     0   :  { %s1598_s15 = smov 0   ;;  %s1600_s16 = smov 0   ;;  %s1772_s0 = inlined_call_operand.vmem [shape: bf16[2048,128], index: 0, kind: input, shape index: {}]   ;;  %s1773_s1 = inlined_call_operand.vmem [shape: bf16[128,128], index: 1, kind: input, shape index: {}]   ;;  %s1774_s2 = inlined_call_operand.vmem [shape: f32[1,128], index: 2, kind: input, shape index: {}]   ;;  %s1775_s3 = inlined_call_operand.vmem [shape: f32[1,128], index: 3, kind: input, shape index: {}]   ;;  %s1776_s4 = inlined_call_operand.vmem [shape: bf16[2048,128], index: 4, kind: output, shape index: {}]  }
   0x1   :  { %s1602_s17 = smov 0  }
   0x2 LB: > { %s33_s18 = sadd.s32 1, %s1567_s16  ;;  %p1221_p0 = scmp.ge.s32.totalorder %s1571_s17, 1  ;;  %s1571_s17 = sphi %s1602_s17, %s14_s17   ;;  %s1567_s16 = sphi %s1600_s16, %s1778_s16   ;;  %s1563_s15 = sphi %s1598_s15, %s1777_s15  }
   0x3   : > { %p35_p1 = scmp.ge.s32.totalorder %s33_s18, 8  ;;  %p221_p2 = scmp.lt.s32.totalorder %s1571_s17, 9 }
   0x5   : > { %s1780_s18 = smov (%p35_p1, %s33_s18), 0  ;;  %p222_p3 = pnand %p1221_p0, %p221_p2 }
   0x6   : > { %v1525_v0 = vld [vmem:[%s1773_s1] sm:$0xff] (!%p222_p3)   ;;  %s1222_s21 = sshll.u32 (!%p222_p3), %s1563_s15, 5  ;;  %v1526_v1 = vld [vmem:[%s1773_s1 + $0x8] sm:$0xff] (!%p222_p3)   ;;  %v1527_v2 = vld [vmem:[%s1773_s1 + $0x10] sm:$0xff] (!%p222_p3)  }
   0x7   : > { %225 = sbr.rel (%p222_p3) target bundleno = 288 (0x120), region = 36  ;;  %p268_p4 = scmp.lt.s32.totalorder (!%p222_p3), %s1222_s21, 255  ;;  %1437 = vmatprep.subr.bf16.mxu0 (!%p222_p3), %v1525_v0  ;;  %1485 = vmatprep.subr.bf16.mxu1 (!%p222_p3), %v1525_v0  ;;  %v1528_v3 = vld [vmem:[%s1773_s1 + $0x18] sm:$0xff] (!%p222_p3)   ;;  %v1529_v6 = vld [vmem:[%s1773_s1 + $0x20] sm:$0xff] (!%p222_p3)   ;;  %v1530_v7 = vld [vmem:[%s1773_s1 + $0x28] sm:$0xff] (!%p222_p3)  }
   0x8   : > { %1438 = vmatpush3.bf16.msra.mxu0 (!%p222_p3), %v1525_v0  ;;  %1493 = vmatpush3.bf16.msra.mxu1 (!%p222_p3), %v1525_v0  ;;  %v1531_v8 = vld [vmem:[%s1773_s1 + $0x30] sm:$0xff] (!%p222_p3)   ;;  %v1532_v9 = vld [vmem:[%s1773_s1 + $0x38] sm:$0xff] (!%p222_p3)   ;;  %v1669_v24 = vld [vmem:[%s1774_s2] ss:$0 sm:$0xff] (!%p222_p3) }
   0x9   : > { %1439 = vmatprep.subr.bf16.mxu0 (!%p222_p3), %v1526_v1  ;;  %1486 = vmatprep.subr.bf16.mxu1 (!%p222_p3), %v1526_v1  ;;  %v1674_v26 = vld [vmem:[%s1775_s3] ss:$0 sm:$0xff] (!%p222_p3) }
   0xc   : > { %1440 = vmatpush3.bf16.msra.mxu0 (!%p222_p3), %v1526_v1  ;;  %1494 = vmatpush3.bf16.msra.mxu1 (!%p222_p3), %v1526_v1 }
   0xd   : > { %1441 = vmatprep.subr.bf16.mxu0 (!%p222_p3), %v1527_v2  ;;  %1487 = vmatprep.subr.bf16.mxu1 (!%p222_p3), %v1527_v2 }
   0xe   : > { %s1782_s21 = smov (!%p268_p4, %s1222_s21), 255 }
   0xf   : > { %s1223_s26 = sshll.u32 %s1782_s21, 2 }
  0x10   : > { %s1633_s29 = scalar_lea.vmem %s1772_s0, %s1223_s26  ;;  %1442 = vmatpush3.bf16.msra.mxu0 %v1527_v2  ;;  %1495 = vmatpush3.bf16.msra.mxu1 %v1527_v2  ;;  %s1697_s24 = scalar_lea.vmem %s1776_s4, %s1223_s26 }
  0x11   : > { %v1533_v4 = vld [vmem:[%s1633_s29] sm:$0xff]   ;;  %1443 = vmatprep.subr.bf16.mxu0 %v1528_v3  ;;  %1488 = vmatprep.subr.bf16.mxu1 %v1528_v3  ;;  %v1535_v10 = vld [vmem:[%s1633_s29 + $0x8] sm:$0xff]   ;;  %v1537_v12 = vld [vmem:[%s1633_s29 + $0x10] sm:$0xff]  }
  0x12   : > { %v1534_v5 = vld [vmem:[%s1633_s29 + $0x40] sm:$0xff]   ;;  %1453 = vmatprep.mubr.bf16.mxu0 %v1533_v4  ;;  %v1536_v11 = vld [vmem:[%s1633_s29 + $0x48] sm:$0xff]   ;;  %v1538_v13 = vld [vmem:[%s1633_s29 + $0x50] sm:$0xff]  }
  0x13   : > { %1469 = vmatprep.mubr.bf16.mxu1 %v1534_v5  ;;  %v1539_v14 = vld [vmem:[%s1633_s29 + $0x18] sm:$0xff]   ;;  %v1541_v16 = vld [vmem:[%s1633_s29 + $0x20] sm:$0xff]   ;;  %v1543_v18 = vld [vmem:[%s1633_s29 + $0x28] sm:$0xff]  }
  0x14   : > { %1444 = vmatpush3.bf16.msra.mxu0 %v1528_v3  ;;  %1496 = vmatpush3.bf16.msra.mxu1 %v1528_v3  ;;  %v1540_v15 = vld [vmem:[%s1633_s29 + $0x58] sm:$0xff]   ;;  %v1542_v17 = vld [vmem:[%s1633_s29 + $0x60] sm:$0xff]   ;;  %v1544_v19 = vld [vmem:[%s1633_s29 + $0x68] sm:$0xff]  }
  0x15   : > { %1445 = vmatprep.subr.bf16.mxu0 %v1529_v6  ;;  %1489 = vmatprep.subr.bf16.mxu1 %v1529_v6  ;;  %v1545_v20 = vld [vmem:[%s1633_s29 + $0x30] sm:$0xff]   ;;  %v1547_v22 = vld [vmem:[%s1633_s29 + $0x38] sm:$0xff]  }
  0x16   : > { %v1546_v21 = vld [vmem:[%s1633_s29 + $0x70] sm:$0xff]   ;;  %v1548_v23 = vld [vmem:[%s1633_s29 + $0x78] sm:$0xff]  }
  0x18   : > { %1446 = vmatpush3.bf16.msra.mxu0 %v1529_v6  ;;  %1497 = vmatpush3.bf16.msra.mxu1 %v1529_v6 }
  0x19   : > { %1447 = vmatprep.subr.bf16.mxu0 %v1530_v7  ;;  %1490 = vmatprep.subr.bf16.mxu1 %v1530_v7 }
  0x1c   : > { %1448 = vmatpush3.bf16.msra.mxu0 %v1530_v7  ;;  %1498 = vmatpush3.bf16.msra.mxu1 %v1530_v7 }
  0x1d   : > { %1449 = vmatprep.subr.bf16.mxu0 %v1531_v8  ;;  %1491 = vmatprep.subr.bf16.mxu1 %v1531_v8 }
  0x20   : > { %1450 = vmatpush3.bf16.msra.mxu0 %v1531_v8  ;;  %1499 = vmatpush3.bf16.msra.mxu1 %v1531_v8 }
  0x21   : > { %1451 = vmatprep.subr.bf16.mxu0 %v1532_v9  ;;  %1492 = vmatprep.subr.bf16.mxu1 %v1532_v9 }
  0x24   : > { %1452 = vmatpush3.bf16.msra.mxu0 %v1532_v9  ;;  %1500 = vmatpush3.bf16.msra.mxu1 %v1532_v9 }
  0x27   : > { %1454 = vmatmul.mubr.bf16.vlgmr.msra.gmra.mrb[0].mxu0 %v1535_v10  ;;  %1470 = vmatmul.mubr.bf16.vlgmr.msra.gmra.mrb[0].mxu1 %v1536_v11 }
  0x28   : > { %1457 = vmatprep.mubr.bf16.mxu0 %v1537_v12  ;;  %1473 = vmatprep.mubr.bf16.mxu1 %v1538_v13 }
  0x2f   : > { %1458 = vmatmul.mubr.bf16.gmra.mrb[4].mxu0 %v1539_v14  ;;  %1474 = vmatmul.mubr.bf16.gmra.mrb[4].mxu1 %v1540_v15 }
  0x30   : > { %1461 = vmatprep.mubr.bf16.mxu0 %v1541_v16  ;;  %1477 = vmatprep.mubr.bf16.mxu1 %v1542_v17 }
  0x37   : > { %1462 = vmatmul.mubr.bf16.gmra.mrb[8].mxu0 %v1543_v18  ;;  %1478 = vmatmul.mubr.bf16.gmra.mrb[8].mxu1 %v1544_v19 }
  0x38   : > { %1465 = vmatprep.mubr.bf16.mxu0 %v1545_v20  ;;  %1481 = vmatprep.mubr.bf16.mxu1 %v1546_v21 }
  0x3f   : > { %1466 = vmatmul.mubr.bf16.gmra.mrb[12].mxu0 %v1547_v22  ;;  %1482 = vmatmul.mubr.bf16.gmra.mrb[12].mxu1 %v1548_v23 }
  0xfa   : > { %v1455_v25 = vpop.f32.mrb[0].mxu0  ;;  %v1471_v27 = vpop.f32.mrb[0].mxu1 }
  0xfb   : > { %v830_v28 = vmul.f32 %v1455_v25, %v1669_v24  ;;  %v846_v29 = vmul.f32 %v1471_v27, %v1669_v24  ;;  %v595_v30 = vpop.f32.mrb[1].mxu0  ;;  %v659_v31 = vpop.f32.mrb[1].mxu1 }
  0xfc   : > { %v828_v32 = vmul.f32 %v1669_v24, %v595_v30  ;;  %v844_v33 = vmul.f32 %v1669_v24, %v659_v31  ;;  %v1456_v34 = vpop.f32.mrb[2].mxu0  ;;  %v1472_v35 = vpop.f32.mrb[2].mxu1 }
  0xfd   : > { %v869_v36 = vadd.f32 %v1674_v26, %v830_v28  ;;  %v885_v37 = vadd.f32 %v1674_v26, %v846_v29  ;;  %v831_v38 = vmul.f32 %v1456_v34, %v1669_v24  ;;  %v847_v39 = vmul.f32 %v1472_v35, %v1669_v24  ;;  %v598_v40 = vpop.f32.mrb[3].mxu0  ;;  %v662_v41 = vpop.f32.mrb[3].mxu1 }
  0xfe   : > { %v867_v42 = vadd.f32 %v1674_v26, %v828_v32  ;;  %v883_v43 = vadd.f32 %v1674_v26, %v844_v33  ;;  %v829_v44 = vmul.f32 %v1669_v24, %v598_v40  ;;  %v845_v45 = vmul.f32 %v1669_v24, %v662_v41 }
  0xff   : > { %v870_v46 = vadd.f32 %v1674_v26, %v831_v38  ;;  %v886_v47 = vadd.f32 %v1674_v26, %v847_v39  ;;  %v901_v50 = vmax.f32 %v869_v36, 0.0  ;;  %v917_v51 = vmax.f32 %v885_v37, 0.0 }
 0x100   : > { %v868_v48 = vadd.f32 %v1674_v26, %v829_v44  ;;  %v884_v49 = vadd.f32 %v1674_v26, %v845_v45  ;;  %v899_v54 = vmax.f32 %v867_v42, 0.0  ;;  %v915_v55 = vmax.f32 %v883_v43, 0.0 }
 0x101   : > { %v902_v52 = vmax.f32 %v870_v46, 0.0  ;;  %v918_v53 = vmax.f32 %v886_v47, 0.0 }
 0x102   : > { %v900_v56 = vmax.f32 %v868_v48, 0.0  ;;  %v916_v57 = vmax.f32 %v884_v49, 0.0  ;;  %v1459_v58 = vpop.f32.mrb[4].mxu0  ;;  %v1475_v59 = vpop.f32.mrb[4].mxu1 }
 0x103   : > { %v1326_v60 = vpack.c.bf16 %v902_v52, %v901_v50  ;;  %v1366_v61 = vpack.c.bf16 %v918_v53, %v917_v51  ;;  %v834_v62 = vmul.f32 %v1459_v58, %v1669_v24  ;;  %v850_v63 = vmul.f32 %v1475_v59, %v1669_v24  ;;  %v611_v0 = vpop.f32.mrb[5].mxu0  ;;  %v675_v1 = vpop.f32.mrb[5].mxu1 }
 0x104   : > { %v1321_v2 = vpack.c.bf16 %v900_v56, %v899_v54  ;;  %v1361_v3 = vpack.c.bf16 %v916_v57, %v915_v55  ;;  %v832_v4 = vmul.f32 %v1669_v24, %v611_v0  ;;  %v848_v5 = vmul.f32 %v1669_v24, %v675_v1  ;;  %v1460_v6 = vpop.f32.mrb[6].mxu0  ;;  %v1476_v7 = vpop.f32.mrb[6].mxu1 }
 0x105   : > { %1398 = vst [vmem:[%s1697_s24 + $0x8] sm:$0xff] %v1326_v60   ;;  %1406 = vst [vmem:[%s1697_s24 + $0x48] sm:$0xff] %v1366_v61   ;;  %v873_v8 = vadd.f32 %v1674_v26, %v834_v62  ;;  %v889_v9 = vadd.f32 %v1674_v26, %v850_v63  ;;  %v835_v10 = vmul.f32 %v1460_v6, %v1669_v24  ;;  %v614_v12 = vpop.f32.mrb[7].mxu0  ;;  %v678_v13 = vpop.f32.mrb[7].mxu1 }
 0x106   : > { %v851_v11 = vmul.f32 %v1476_v7, %v1669_v24  ;;  %1322 = vst [vmem:[%s1697_s24] sm:$0xff] %v1321_v2   ;;  %1405 = vst [vmem:[%s1697_s24 + $0x40] sm:$0xff] %v1361_v3   ;;  %v871_v14 = vadd.f32 %v1674_v26, %v832_v4  ;;  %v887_v15 = vadd.f32 %v1674_v26, %v848_v5 }
 0x107   : > { %v833_v16 = vmul.f32 %v1669_v24, %v614_v12  ;;  %v849_v17 = vmul.f32 %v1669_v24, %v678_v13  ;;  %v874_v18 = vadd.f32 %v1674_v26, %v835_v10  ;;  %v905_v22 = vmax.f32 %v873_v8, 0.0 }
 0x108   : > { %v890_v19 = vadd.f32 %v1674_v26, %v851_v11  ;;  %v921_v23 = vmax.f32 %v889_v9, 0.0  ;;  %v903_v28 = vmax.f32 %v871_v14, 0.0  ;;  %v919_v29 = vmax.f32 %v887_v15, 0.0 }
 0x109   : > { %v872_v20 = vadd.f32 %v1674_v26, %v833_v16  ;;  %v888_v21 = vadd.f32 %v1674_v26, %v849_v17  ;;  %v906_v25 = vmax.f32 %v874_v18, 0.0 }
 0x10a   : > { %v922_v27 = vmax.f32 %v890_v19, 0.0  ;;  %v1463_v32 = vpop.f32.mrb[8].mxu0  ;;  %v1479_v33 = vpop.f32.mrb[8].mxu1 }
 0x10b   : > { %v904_v30 = vmax.f32 %v872_v20, 0.0  ;;  %v920_v31 = vmax.f32 %v888_v21, 0.0  ;;  %v1336_v34 = vpack.c.bf16 %v906_v25, %v905_v22  ;;  %v838_v36 = vmul.f32 %v1463_v32, %v1669_v24  ;;  %v627_v38 = vpop.f32.mrb[9].mxu0  ;;  %v691_v39 = vpop.f32.mrb[9].mxu1 }
 0x10c   : > { %v1376_v35 = vpack.c.bf16 %v922_v27, %v921_v23  ;;  %v854_v37 = vmul.f32 %v1479_v33, %v1669_v24  ;;  %v836_v42 = vmul.f32 %v1669_v24, %v627_v38  ;;  %v852_v43 = vmul.f32 %v1669_v24, %v691_v39  ;;  %v1464_v44 = vpop.f32.mrb[10].mxu0  ;;  %v1480_v45 = vpop.f32.mrb[10].mxu1 }
 0x10d   : > { %v1331_v40 = vpack.c.bf16 %v904_v30, %v903_v28  ;;  %v1371_v41 = vpack.c.bf16 %v920_v31, %v919_v29  ;;  %1400 = vst [vmem:[%s1697_s24 + $0x18] sm:$0xff] %v1336_v34   ;;  %v877_v46 = vadd.f32 %v1674_v26, %v838_v36  ;;  %v839_v48 = vmul.f32 %v1464_v44, %v1669_v24  ;;  %v630_v50 = vpop.f32.mrb[11].mxu0  ;;  %v694_v51 = vpop.f32.mrb[11].mxu1 }
 0x10e   : > { %1408 = vst [vmem:[%s1697_s24 + $0x58] sm:$0xff] %v1376_v35   ;;  %v893_v47 = vadd.f32 %v1674_v26, %v854_v37  ;;  %v855_v49 = vmul.f32 %v1480_v45, %v1669_v24  ;;  %v875_v52 = vadd.f32 %v1674_v26, %v836_v42  ;;  %v891_v53 = vadd.f32 %v1674_v26, %v852_v43 }
 0x10f   : > { %1399 = vst [vmem:[%s1697_s24 + $0x10] sm:$0xff] %v1331_v40   ;;  %1407 = vst [vmem:[%s1697_s24 + $0x50] sm:$0xff] %v1371_v41   ;;  %v837_v54 = vmul.f32 %v1669_v24, %v630_v50  ;;  %v853_v55 = vmul.f32 %v1669_v24, %v694_v51  ;;  %v878_v56 = vadd.f32 %v1674_v26, %v839_v48  ;;  %v909_v60 = vmax.f32 %v877_v46, 0.0 }
 0x110   : > { %v894_v57 = vadd.f32 %v1674_v26, %v855_v49  ;;  %v925_v61 = vmax.f32 %v893_v47, 0.0  ;;  %v907_v0 = vmax.f32 %v875_v52, 0.0  ;;  %v923_v1 = vmax.f32 %v891_v53, 0.0 }
 0x111   : > { %v876_v58 = vadd.f32 %v1674_v26, %v837_v54  ;;  %v892_v59 = vadd.f32 %v1674_v26, %v853_v55  ;;  %v910_v62 = vmax.f32 %v878_v56, 0.0 }
 0x112   : > { %v926_v63 = vmax.f32 %v894_v57, 0.0  ;;  %v1467_v4 = vpop.f32.mrb[12].mxu0  ;;  %v1483_v5 = vpop.f32.mrb[12].mxu1 }
 0x113   : > { %v908_v2 = vmax.f32 %v876_v58, 0.0  ;;  %v924_v3 = vmax.f32 %v892_v59, 0.0  ;;  %v1346_v6 = vpack.c.bf16 %v910_v62, %v909_v60  ;;  %v842_v8 = vmul.f32 %v1467_v4, %v1669_v24  ;;  %v643_v10 = vpop.f32.mrb[13].mxu0  ;;  %v707_v11 = vpop.f32.mrb[13].mxu1 }
 0x114   : > { %v1386_v7 = vpack.c.bf16 %v926_v63, %v925_v61  ;;  %v858_v9 = vmul.f32 %v1483_v5, %v1669_v24  ;;  %v840_v14 = vmul.f32 %v1669_v24, %v643_v10  ;;  %v856_v15 = vmul.f32 %v1669_v24, %v707_v11  ;;  %v1468_v16 = vpop.f32.mrb[14].mxu0  ;;  %v1484_v17 = vpop.f32.mrb[14].mxu1 }
 0x115   : > { %v1341_v12 = vpack.c.bf16 %v908_v2, %v907_v0  ;;  %v1381_v13 = vpack.c.bf16 %v924_v3, %v923_v1  ;;  %1402 = vst [vmem:[%s1697_s24 + $0x28] sm:$0xff] %v1346_v6   ;;  %v881_v18 = vadd.f32 %v1674_v26, %v842_v8  ;;  %v843_v20 = vmul.f32 %v1468_v16, %v1669_v24  ;;  %v646_v22 = vpop.f32.mrb[15].mxu0  ;;  %v710_v23 = vpop.f32.mrb[15].mxu1 }
 0x116   : > { %1410 = vst [vmem:[%s1697_s24 + $0x68] sm:$0xff] %v1386_v7   ;;  %v897_v19 = vadd.f32 %v1674_v26, %v858_v9  ;;  %v859_v21 = vmul.f32 %v1484_v17, %v1669_v24  ;;  %v879_v25 = vadd.f32 %v1674_v26, %v840_v14  ;;  %v895_v27 = vadd.f32 %v1674_v26, %v856_v15 }
 0x117   : > { %1401 = vst [vmem:[%s1697_s24 + $0x20] sm:$0xff] %v1341_v12   ;;  %1409 = vst [vmem:[%s1697_s24 + $0x60] sm:$0xff] %v1381_v13   ;;  %v841_v28 = vmul.f32 %v1669_v24, %v646_v22  ;;  %v857_v29 = vmul.f32 %v1669_v24, %v710_v23  ;;  %v882_v30 = vadd.f32 %v1674_v26, %v843_v20  ;;  %v913_v34 = vmax.f32 %v881_v18, 0.0 }
 0x118   : > { %v898_v31 = vadd.f32 %v1674_v26, %v859_v21  ;;  %v929_v35 = vmax.f32 %v897_v19, 0.0  ;;  %v911_v38 = vmax.f32 %v879_v25, 0.0  ;;  %v927_v39 = vmax.f32 %v895_v27, 0.0 }
 0x119   : > { %v880_v32 = vadd.f32 %v1674_v26, %v841_v28  ;;  %v896_v33 = vadd.f32 %v1674_v26, %v857_v29  ;;  %v914_v36 = vmax.f32 %v882_v30, 0.0 }
 0x11a   : > { %v930_v37 = vmax.f32 %v898_v31, 0.0 }
 0x11b   : > { %v912_v40 = vmax.f32 %v880_v32, 0.0  ;;  %v928_v24 = vmax.f32 %v896_v33, 0.0  ;;  %v1356_v41 = vpack.c.bf16 %v914_v36, %v913_v34 }
 0x11c   : > { %v1396_v42 = vpack.c.bf16 %v930_v37, %v929_v35 }
 0x11d   : > { %v1351_v43 = vpack.c.bf16 %v912_v40, %v911_v38  ;;  %v1391_v44 = vpack.c.bf16 %v928_v24, %v927_v39  ;;  %1404 = vst [vmem:[%s1697_s24 + $0x38] sm:$0xff] %v1356_v41  }
 0x11e   : > { %1412 = vst [vmem:[%s1697_s24 + $0x78] sm:$0xff] %v1396_v42  }
 0x11f   : > { %1403 = vst [vmem:[%s1697_s24 + $0x30] sm:$0xff] %v1351_v43   ;;  %1411 = vst [vmem:[%s1697_s24 + $0x70] sm:$0xff] %v1391_v44  }
 0x120 PF: > { %s14_s17 = sadd.s32 1, %s1571_s17   ;;  %s1777_s15 = smov %s1567_s16 }
 0x121   : > { %p11_p5 = scmp.ge.s32.totalorder %s14_s17, 10   ;;  %s1778_s16 = smov %s1780_s18 }
 0x123   :  { %13 = sbr.rel (!%p11_p5) target bundleno = 2 (0x2), region = 83 }

</bundles_post_ra>
